<compile_context>
chip_gen: v7x
topology: tpu7x:2x2x1
jax: 0.10.0
libtpu: 0.0.40
codegen_flags: <defaults>
</compile_context>

<pallas_src>
import jax
import jax.numpy as jnp
from jax.experimental import pallas as pl
from jax.experimental.pallas import tpu as pltpu


def decoder_kernel(z_ref, w1_ref, w2_ref, b2_ref, recon_ref, declat_ref):
    """One batch tile, lane-dense folded layout.

    z_ref      : [tb_d, fold*d_lat] f32   (fold latent rows packed per dense row)
    w1_ref     : [fold*d_lat, fold*hdim]  bf16  block-diag replicated W1^T
    w2_ref     : [fold*hdim, fold*d_out]  bf16  block-diag replicated W2^T
    b2_ref     : [1, fold*d_out]   f32    bias tiled `fold` times
    recon_ref  : [tb_d, fold*d_out]
    declat_ref : [tb_d, fold*d_lat] f32
    """
    # FirstL: ReLU only (no BN / dropout in this configuration) -- exact f32,
    # stored lane-dense (unmasked vst).
    dec_latent = jnp.maximum(z_ref[...], 0.0)
    declat_ref[...] = dec_latent.astype(declat_ref.dtype)

    # HiddenL: Linear(bias=False) + ReLU. bf16 into the MXU, f32 accumulate.
    # Block-diagonal weights make this mathematically identical to the per-row
    # [d_lat]x[d_lat,hdim] matmul (extra terms are exact zeros).
    h = jnp.dot(dec_latent.astype(jnp.bfloat16), w1_ref[...],
                preferred_element_type=jnp.float32)
    h = jnp.maximum(h, 0.0)

    # recon_decoder: Linear(bias=True) + ReLU. Epilogue stays in f32.
    r = jnp.dot(h.astype(jnp.bfloat16), w2_ref[...],
                preferred_element_type=jnp.float32) + b2_ref[...]
    recon_ref[...] = jnp.maximum(r, 0.0).astype(recon_ref.dtype)


def _vmem_budget_bytes():
    # Generation-aware budget: ~60% of physical VMEM (v7x 64 MiB -> ~38 MiB,
    # v5e/v6e 128 MiB -> ~76 MiB). Conservative fallback if the query fails.
    try:
        cap = int(pltpu.get_tpu_info().vmem_capacity_bytes)
    except Exception:
        cap = 64 << 20
    return max(16 << 20, int(cap * 0.6))


def _choose_fold(d_lat):
    # Smallest fold in {1,2,4,8} making the z / dec_latent lane dim a multiple
    # of the 128-lane vreg (fold=4 for this module's d_lat=32). fold=1 falls
    # back to the (correct but partially masked) narrow-lane path.
    for f in (1, 2, 4, 8):
        if (d_lat * f) % 128 == 0:
            return f
    return 1


def _choose_tile_rows(n_align, fold, d_lat, hdim, d_out, requested, vmem_budget_bytes):
    """Pick a batch tile (in original rows): multiple of 8*fold, within the
    VMEM budget, no forced multi-step splitting (single-TC grids are serial)."""
    row_align = 8 * fold
    # Per original-row VMEM footprint: double-buffered f32 I/O tiles plus the
    # h intermediate and bf16 cast temporaries the compiler materializes.
    per_row = (2 * 4 * (2 * d_lat + d_out)     # z + dec_latent + recon tiles (x2 buffers)
               + 4 * hdim                       # h (f32)
               + 2 * (d_lat + hdim))            # bf16 casts of z and h
    max_rows = max(row_align, (vmem_budget_bytes // per_row) // row_align * row_align)
    tile = min(requested, max_rows, n_align)
    tile = max(row_align, (tile // row_align) * row_align)
    if n_align % tile != 0:
        # Prefer a tile that divides n_align: avoids padding z to a tile
        # multiple and slicing the outputs (each an extra full HBM pass).
        best = 0
        t = tile
        while t >= row_align:
            if n_align % t == 0:
                best = t
                break
            t -= row_align
        if best * 2 >= tile:   # accept only if it doesn't shrink the tile too much
            tile = best
    return tile


def decoder_forward(z, w1, w2, b2, *, tile_b=2048, recon_dtype=jnp.float32):
    """z: [N, d_lat]; w1: [hdim, d_lat]; w2: [d_out, hdim]; b2: [d_out]
    (PyTorch-style [out, in] weights). Returns (recon_x [N, d_out], dec_latent [N, d_lat])."""
    z = z.astype(jnp.float32)
    n, d_lat = z.shape
    hdim = w1.shape[0]
    d_out = w2.shape[0]

    fold = _choose_fold(d_lat)
    row_align = 8 * fold
    lane_in, lane_h, lane_out = d_lat * fold, hdim * fold, d_out * fold

    # Glue: [out,in] -> [in,out], bf16 for the MXU, replicated block-diagonally
    # so the folded (lane-dense) activations multiply correctly. Weights are
    # tiny (<1 MiB) and stay resident in VMEM across the whole grid.
    eye = jnp.eye(fold, dtype=jnp.bfloat16)
    w1_bd = jnp.kron(eye, w1.T.astype(jnp.bfloat16))          # [lane_in, lane_h]
    w2_bd = jnp.kron(eye, w2.T.astype(jnp.bfloat16))          # [lane_h, lane_out]
    b2_row = jnp.tile(b2.astype(jnp.float32), fold).reshape(1, lane_out)

    budget = _vmem_budget_bytes()
    n_align = pl.cdiv(n, row_align) * row_align
    tb = _choose_tile_rows(n_align, fold, d_lat, hdim, d_out, tile_b, budget)
    n_pad = pl.cdiv(n_align, tb) * tb
    # TODO(synk): when padding is unavoidable (N not a tile multiple), a masked
    # store on the ragged last tile would remove the pad/slice copies entirely.
    z_p = jnp.pad(z, ((0, n_pad - n), (0, 0))) if n_pad != n else z

    tb_d = tb // fold
    n_dense = n_pad // fold
    z_dense = z_p.reshape(n_dense, lane_in)    # bit-identical row-major view (free)
    grid = (n_dense // tb_d,)

    # Explicit VMEM accounting: double-buffered I/O tiles + resident weights +
    # h intermediate + bf16 cast temporaries, plus margin.
    footprint = (
        2 * tb_d * lane_in * 4             # z tiles
        + 2 * tb_d * lane_in * 4           # dec_latent tiles
        + 2 * tb_d * lane_out * 4          # recon tiles
        + tb_d * (lane_h * 4 + lane_in * 2 + lane_h * 2)   # h (f32) + bf16 casts
        + 2 * (lane_in * lane_h * 2 + lane_h * lane_out * 2 + lane_out * 4)
    )
    vmem_limit = int(min(max(footprint + (8 << 20), 16 << 20), 112 << 20))

    cost = pl.CostEstimate(
        flops=2 * n_dense * (lane_in * lane_h + lane_h * lane_out),
        transcendentals=0,
        bytes_accessed=(n_pad * d_lat * 4                          # z in
                        + lane_in * lane_h * 2 + lane_h * lane_out * 2   # weights (bf16)
                        + lane_out * 4                              # bias
                        + n_pad * d_out * 4                         # recon out
                        + n_pad * d_lat * 4),                       # dec_latent out
    )

    recon_dense, declat_dense = pl.pallas_call(
        decoder_kernel,
        out_shape=(
            jax.ShapeDtypeStruct((n_dense, lane_out), recon_dtype),
            jax.ShapeDtypeStruct((n_dense, lane_in), jnp.float32),
        ),
        grid_spec=pltpu.PrefetchScalarGridSpec(
            num_scalar_prefetch=0,
            grid=grid,
            in_specs=[
                pl.BlockSpec((tb_d, lane_in), lambda i: (i, 0)),     # z tile (lane-dense)
                pl.BlockSpec((lane_in, lane_h), lambda i: (0, 0)),   # W1 block-diag (resident)
                pl.BlockSpec((lane_h, lane_out), lambda i: (0, 0)),  # W2 block-diag (resident)
                pl.BlockSpec((1, lane_out), lambda i: (0, 0)),       # bias (resident)
            ],
            out_specs=[
                pl.BlockSpec((tb_d, lane_out), lambda i: (i, 0)),    # recon_x
                pl.BlockSpec((tb_d, lane_in), lambda i: (i, 0)),     # dec_latent
            ],
        ),
        compiler_params=pltpu.CompilerParams(
            dimension_semantics=("parallel",),
            vmem_limit_bytes=vmem_limit,
        ),
        cost_estimate=cost,
    )(z_dense, w1_bd, w2_bd, b2_row)

    recon = recon_dense.reshape(n_pad, d_out)
    dec_latent = declat_dense.reshape(n_pad, d_lat)
    if n_pad != n:
        # Padded rows carry ReLU(b2) in recon -- never sum a loss over the
        # unsliced padded output; keep the slice.
        recon = recon[:n]
        dec_latent = dec_latent[:n]
    return recon, dec_latent


def reference_forward_f32(z, w1, w2, b2):
    dec_latent = jnp.maximum(z, 0.0)
    h = jnp.maximum(dec_latent @ w1.T, 0.0)
    recon = jnp.maximum(h @ w2.T + b2[None, :], 0.0)
    return recon, dec_latent


def reference_forward_bf16(z, w1, w2, b2):
    # Matches the kernel's mixed precision (bf16 MXU inputs, f32 accumulate).
    dec_latent = jnp.maximum(z, 0.0)
    h = jnp.dot(dec_latent.astype(jnp.bfloat16), w1.T.astype(jnp.bfloat16),
                preferred_element_type=jnp.float32)
    h = jnp.maximum(h, 0.0)
    r = jnp.dot(h.astype(jnp.bfloat16), w2.T.astype(jnp.bfloat16),
                preferred_element_type=jnp.float32) + b2[None, :].astype(jnp.float32)
    return jnp.maximum(r, 0.0), dec_latent


if __name__ == "__main__":
    # Module config: latent_dim=32, layer_sizes=[32, 64, 128], recon_loss='mse',
    # use_bn=False, use_dr=False, num_classes=None  ->
    #   full layer_sizes = [32, 32, 64, 128]
    #   FirstL        = ReLU
    #   HiddenL       = Linear(32 -> 64, bias=False) + ReLU
    #   recon_decoder = Linear(64 -> 128, bias=True) + ReLU
    latent_dim, hidden_dim, out_dim = 32, 64, 128
    batch_n = 50  # deliberately not a multiple of the 32-row alignment: exercises pad/slice

    key = jax.random.PRNGKey(0)
    k_z, k_w1, k_w2, k_b2 = jax.random.split(key, 4)

    z = jax.random.normal(k_z, (batch_n, latent_dim), dtype=jnp.float32)

    # PyTorch-style weight shapes [out, in]; deterministic init.
    w1 = jax.random.normal(k_w1, (hidden_dim, latent_dim), dtype=jnp.float32) * 0.1
    w2 = jax.random.normal(k_w2, (out_dim, hidden_dim), dtype=jnp.float32) * 0.1
    b2 = jax.random.normal(k_b2, (out_dim,), dtype=jnp.float32) * 0.1

    recon_x, dec_latent = decoder_forward(z, w1, w2, b2)
    recon_x = jax.block_until_ready(recon_x)
    dec_latent = jax.block_until_ready(dec_latent)

    assert recon_x.shape == (batch_n, out_dim)
    assert dec_latent.shape == (batch_n, latent_dim)

    # dec_latent is an exact f32 ReLU -- tight check.
    ref_recon_f32, ref_latent = reference_forward_f32(z, w1, w2, b2)
    assert jnp.allclose(dec_latent, ref_latent, atol=1e-6, rtol=1e-6)

    # recon path uses bf16 MXU inputs: tight vs bf16-matched ref, loose vs f32 ref.
    ref_recon_bf16, _ = reference_forward_bf16(z, w1, w2, b2)
    assert jnp.allclose(recon_x, ref_recon_bf16, atol=2e-3, rtol=2e-3)
    assert jnp.allclose(recon_x, ref_recon_f32, atol=5e-2, rtol=5e-2)

    # TODO(synk): 'nb'/'zinb' heads, BatchNorm1d, Dropout and the conditional
    # (batch one-hot concat) branches are not exercised in this configuration.
    print("KERNEL_OK")
</pallas_src>

<mosaic_0001>
module attributes {stable_mosaic.version = 11 : i64} {
  func.func @decoder_kernel(%arg0: i32, %arg1: memref<16x128xf32, #tpu.memory_space<vmem>>, %arg2: memref<128x256xbf16, #tpu.memory_space<vmem>>, %arg3: memref<256x512xbf16, #tpu.memory_space<vmem>>, %arg4: memref<1x512xf32, #tpu.memory_space<vmem>>, %arg5: memref<16x512xf32, #tpu.memory_space<vmem>>, %arg6: memref<16x128xf32, #tpu.memory_space<vmem>>) attributes {dimension_semantics = [#tpu.dimension_semantics<parallel>], iteration_bounds = array<i64: 1>, scalar_prefetch = 0 : i64, scratch_operands = 0 : i64, tpu.core_type = #tpu.core_type<tc>, window_params = [{transform_indices = @transform_0, window_bounds = array<i64: 16, 128>}, {pipeline_mode = #tpu.pipeline_mode<synchronous>, transform_indices = @transform_1, window_bounds = array<i64: 128, 256>}, {pipeline_mode = #tpu.pipeline_mode<synchronous>, transform_indices = @transform_2, window_bounds = array<i64: 256, 512>}, {pipeline_mode = #tpu.pipeline_mode<synchronous>, transform_indices = @transform_3, window_bounds = array<i64: 1, 512>}, {transform_indices = @transform_4, window_bounds = array<i64: 16, 512>}, {transform_indices = @transform_5, window_bounds = array<i64: 16, 128>}]} {
    %c0 = arith.constant 0 : index
    %c0_0 = arith.constant 0 : index
    %0 = vector.load %arg1[%c0, %c0_0] : memref<16x128xf32, #tpu.memory_space<vmem>>, vector<16x128xf32>
    %cst = arith.constant 0.000000e+00 : f32
    %1 = vector.broadcast %cst : f32 to vector<16x128xf32>
    %2 = arith.maximumf %0, %1 : vector<16x128xf32>
    %c0_1 = arith.constant 0 : index
    %c0_2 = arith.constant 0 : index
    %3 = vector.load %arg6[%c0_1, %c0_2] : memref<16x128xf32, #tpu.memory_space<vmem>>, vector<16x128xf32>
    tpu.vector_store %arg6[%c0_1, %c0_2], %2 {strides = array<i32>} : memref<16x128xf32, #tpu.memory_space<vmem>>, vector<16x128xf32>,
    %4 = arith.truncf %2 : vector<16x128xf32> to vector<16x128xbf16>
    %c0_3 = arith.constant 0 : index
    %c0_4 = arith.constant 0 : index
    %5 = vector.load %arg2[%c0_3, %c0_4] : memref<128x256xbf16, #tpu.memory_space<vmem>>, vector<128x256xbf16>
    %cst_5 = arith.constant dense<0.000000e+00> : vector<16x256xf32>
    %6 = tpu.matmul %4, %5, %cst_5 {dimension_numbers = #tpu.dot_dimension_numbers<[1], [0], [0], [1], [0, 0, 1, 1], [], []>} : vector<16x128xbf16>, vector<128x256xbf16>, vector<16x256xf32> -> vector<16x256xf32>
    %cst_6 = arith.constant 0.000000e+00 : f32
    %7 = vector.broadcast %cst_6 : f32 to vector<16x256xf32>
    %8 = arith.maximumf %6, %7 : vector<16x256xf32>
    %9 = arith.truncf %8 : vector<16x256xf32> to vector<16x256xbf16>
    %c0_7 = arith.constant 0 : index
    %c0_8 = arith.constant 0 : index
    %10 = vector.load %arg3[%c0_7, %c0_8] : memref<256x512xbf16, #tpu.memory_space<vmem>>, vector<256x512xbf16>
    %cst_9 = arith.constant dense<0.000000e+00> : vector<16x512xf32>
    %11 = tpu.matmul %9, %10, %cst_9 {dimension_numbers = #tpu.dot_dimension_numbers<[1], [0], [0], [1], [0, 0, 1, 1], [], []>} : vector<16x256xbf16>, vector<256x512xbf16>, vector<16x512xf32> -> vector<16x512xf32>
    %c0_10 = arith.constant 0 : index
    %c0_11 = arith.constant 0 : index
    %12 = vector.load %arg4[%c0_10, %c0_11] : memref<1x512xf32, #tpu.memory_space<vmem>>, vector<1x512xf32>
    %13 = vector.broadcast %12 : vector<1x512xf32> to vector<16x512xf32>
    %14 = arith.addf %11, %13 : vector<16x512xf32>
    %cst_12 = arith.constant 0.000000e+00 : f32
    %15 = vector.broadcast %cst_12 : f32 to vector<16x512xf32>
    %16 = arith.maximumf %14, %15 : vector<16x512xf32>
    %c0_13 = arith.constant 0 : index
    %c0_14 = arith.constant 0 : index
    %17 = vector.load %arg5[%c0_13, %c0_14] : memref<16x512xf32, #tpu.memory_space<vmem>>, vector<16x512xf32>
    tpu.vector_store %arg5[%c0_13, %c0_14], %16 {strides = array<i32>} : memref<16x512xf32, #tpu.memory_space<vmem>>, vector<16x512xf32>,
    return
  }
  func.func @transform_0(%arg0: i32) -> (i32, i32) {
    %c0_i32 = arith.constant 0 : i32
    %c0_i32_0 = arith.constant 0 : i32
    return %arg0, %c0_i32 : i32, i32
  }
  func.func @transform_1(%arg0: i32) -> (i32, i32) {
    %c0_i32 = arith.constant 0 : i32
    %c0_i32_0 = arith.constant 0 : i32
    %c0_i32_1 = arith.constant 0 : i32
    return %c0_i32, %c0_i32_0 : i32, i32
  }
  func.func @transform_2(%arg0: i32) -> (i32, i32) {
    %c0_i32 = arith.constant 0 : i32
    %c0_i32_0 = arith.constant 0 : i32
    %c0_i32_1 = arith.constant 0 : i32
    return %c0_i32, %c0_i32_0 : i32, i32
  }
  func.func @transform_3(%arg0: i32) -> (i32, i32) {
    %c0_i32 = arith.constant 0 : i32
    %c0_i32_0 = arith.constant 0 : i32
    %c0_i32_1 = arith.constant 0 : i32
    return %c0_i32, %c0_i32_0 : i32, i32
  }
  func.func @transform_4(%arg0: i32) -> (i32, i32) {
    %c0_i32 = arith.constant 0 : i32
    %c0_i32_0 = arith.constant 0 : i32
    return %arg0, %c0_i32 : i32, i32
  }
  func.func @transform_5(%arg0: i32) -> (i32, i32) {
    %c0_i32 = arith.constant 0 : i32
    %c0_i32_0 = arith.constant 0 : i32
    return %arg0, %c0_i32 : i32, i32
  }
}

</mosaic_0001>

<bundles_post_ra>
// kernel: tpu_custom_call.1
= control target key start
LH: loop header
LB: loop body
LE: loop exit
PB: predicated region body
PF: predicated region fallthrough
CT: control target
= control target key end

     0   :  { %11 = vsyncpa [#allocation3], 0  ;;  %s1208_s0 = inlined_call_operand.hbm [shape: f32[16,128], index: 0, kind: input, shape index: {}]   ;;  %s1209_s1 = inlined_call_operand.hbm [shape: bf16[128,256], index: 1, kind: input, shape index: {}]   ;;  %s1210_s2 = inlined_call_operand.hbm [shape: bf16[256,512], index: 2, kind: input, shape index: {}]   ;;  %s1211_s3 = inlined_call_operand.vmem [shape: f32[1,512], index: 3, kind: input, shape index: {}]   ;;  %s1212_s4 = inlined_call_operand.hbm [shape: f32[16,512], index: 4, kind: output, shape index: {0}]   ;;  %s1213_s5 = inlined_call_operand.hbm [shape: f32[16,128], index: 5, kind: output, shape index: {1}]  }
   0x1   :  { %12 = vsyncpa [#allocation6], 0 }
   0x2   :  { %13 = vsyncpa [#allocation4], 0 }
   0x3   :  { %14 = vsyncpa [#allocation10], 0  ;;  %s1087_s18 = smov [#allocation5]   ;;  %s1088_s20 = smov [#allocation2]  }
   0x4   :  { %s32_s19 = sshll.u32 %s1087_s18, 4  ;;  %s20_s21 = sshll.u32 %s1088_s20, 4  ;;  %s33_s19 = int_to_ptr.vmem [resolvable:$true] %s32_s19  ;;  %s1129_s21 = int_to_ptr.vmem [resolvable:$true] %s20_s21 }
   0x5   :  { %s969_s24 = scalar_lea.hbm %s1209_s1, 2048 }
   0x6   :  { %p970_p0 = scmp.ne.s32.totalorder %s1209_s1, %s969_s24  ;;  %p973_p1 = scmp.lt.u32.totalorder %s969_s24, %s1209_s1 }
   0x8   :  { %p975_p2 = pnand %p973_p1, %p970_p0 }
   0xa   :  { %978 = shalt.err (!%p975_p2)
}
   0xb   :  { %s979_s29 = scalar_lea.vmem %s33_s19, 2048  ;;  %p984_p4 = scmp.lt.s32.totalorder %s33_s19, %s33_s19 }
   0xc   :  { %p980_p3 = scmp.ne.s32.totalorder %s33_s19, %s979_s29  ;;  %p985_p5 = scmp.lt.s32.totalorder %s979_s29, %s979_s29 }
   0xe   :  { %p986_p6 = por %p985_p5, %p984_p4 }
  0x10   :  { %p987_p7 = pnand %p986_p6, %p980_p3 }
  0x12   :  { %990 = shalt.err (!%p987_p7)
}
  0x13   :  { %s1089_s30 = smov 128   ;;  %s1090_s6 = smov 8  }
  0x14   :  { %38 = dma.hbm_to_vmem [thread:$0]  %s1209_s1, 2048, %s33_s19, [#allocation6], %s1089_s30, %s1089_s30, %s1090_s6  }
  0x15   :  { %s991_s11 = scalar_lea.hbm %s1208_s0, 256 }
  0x16   :  { %p992_p8 = scmp.ne.s32.totalorder %s1208_s0, %s991_s11  ;;  %p995_p9 = scmp.lt.u32.totalorder %s991_s11, %s1208_s0 }
  0x18   :  { %p997_p10 = pnand %p995_p9, %p992_p8 }
  0x1a   :  { %1000 = shalt.err (!%p997_p10)
}
  0x1b   :  { %s1001_s16 = scalar_lea.vmem %s1129_s21, 256  ;;  %p1006_p12 = scmp.lt.s32.totalorder %s1129_s21, %s1129_s21 }
  0x1c   :  { %p1002_p11 = scmp.ne.s32.totalorder %s1129_s21, %s1001_s16  ;;  %p1007_p13 = scmp.lt.s32.totalorder %s1001_s16, %s1001_s16 }
  0x1e   :  { %p1008_p0 = por %p1007_p13, %p1006_p12 }
  0x20   :  { %p1009_p1 = pnand %p1008_p0, %p1002_p11 }
  0x22   :  { %1012 = shalt.err (!%p1009_p1)
}
  0x23   :  { %26 = dma.hbm_to_vmem [thread:$0]  %s1208_s0, 256, %s1129_s21, [#allocation3], %s1089_s30, %s1089_s30, %s1090_s6  }
  0x24   :  { %s1091_s18 = smov [#allocation7]   ;;  %s1013_s23 = scalar_lea.hbm %s1210_s2, 8192 }
  0x25   :  { %s44_s19 = sshll.u32 %s1091_s18, 4  ;;  %p1014_p2 = scmp.ne.s32.totalorder %s1210_s2, %s1013_s23  ;;  %s45_s19 = int_to_ptr.vmem [resolvable:$true] %s44_s19 }
  0x26   :  { %p1017_p3 = scmp.lt.u32.totalorder %s1013_s23, %s1210_s2 }
  0x28   :  { %p1019_p4 = pnand %p1017_p3, %p1014_p2 }
  0x2a   :  { %1022 = shalt.err (!%p1019_p4)
}
  0x2b   :  { %s1023_s28 = scalar_lea.vmem %s45_s19, 8192  ;;  %p1028_p6 = scmp.lt.s32.totalorder %s45_s19, %s45_s19 }
  0x2c   :  { %p1024_p5 = scmp.ne.s32.totalorder %s45_s19, %s1023_s28  ;;  %p1029_p7 = scmp.lt.s32.totalorder %s1023_s28, %s1023_s28 }
  0x2e   :  { %p1030_p8 = por %p1029_p7, %p1028_p6 }
  0x30   :  { %p1031_p9 = pnand %p1030_p8, %p1024_p5 }
  0x32   :  { %1034 = shalt.err (!%p1031_p9)
}
  0x33   :  { %s1092_s0 = smov 256   ;;  %s1093_s21 = smov 16  }
  0x34   :  { %50 = dma.hbm_to_vmem [thread:$0]  %s1210_s2, 8192, %s45_s19, [#allocation6], %s1092_s0, %s1092_s0, %s1093_s21  }
  0x35   :  { %1079 = dma.done.wait [#allocation3], 256  }
  0x36   :  { %1080 = vsyncadd [#allocation3], 4294967040 }
  0x37   :  { %1081 = dma.done.wait [#allocation6], 10240  }
  0x38   :  { %1082 = vsyncadd [#allocation6], 4294957056  ;;  %v1094_v0 = vmov 0   ;;  %v849_v1 = vld [vmem:[#allocation5 + $0x4] ss:$8 sps:$4 sm:$0xff]   ;;  %v63_v10 = vld [vmem:[#allocation2] sm:$0xff] }
  0x39   :  { %198 = vmatprep.mubr.bf16.mxu0 %v1094_v0  ;;  %v851_v2 = vld [vmem:[#allocation5] ss:$8 sps:$4 sm:$0xff]   ;;  %166 = vmatprep.subr.bf16.mxu0 %v849_v1  ;;  %v852_v3 = vld [vmem:[#allocation5 + $0x14] ss:$8 sps:$4 sm:$0xff]   ;;  %v854_v4 = vld [vmem:[#allocation5 + $0x10] ss:$8 sps:$4 sm:$0xff]  }
  0x3a   :  { %167 = vmatpush1.bf16.msra.mxu0 %v851_v2  ;;  %v855_v5 = vld [vmem:[#allocation5 + $0x24] ss:$8 sps:$4 sm:$0xff]   ;;  %v857_v6 = vld [vmem:[#allocation5 + $0x20] ss:$8 sps:$4 sm:$0xff]   ;;  %v858_v7 = vld [vmem:[#allocation5 + $0x34] ss:$8 sps:$4 sm:$0xff]  }
  0x3b   :  { %168 = vmatprep.subr.bf16.mxu0 %v852_v3  ;;  %v860_v8 = vld [vmem:[#allocation5 + $0x30] ss:$8 sps:$4 sm:$0xff]   ;;  %v861_v9 = vld [vmem:[#allocation5 + $0x44] ss:$8 sps:$4 sm:$0xff]   ;;  %v65_v12 = vmax.f32 %v63_v10, 0.0  ;;  %s1095_s2 = smov [#allocation9]  }
  0x3c   :  { %v64_v11 = vld [vmem:[#allocation2 + $0x8] sm:$0xff]  ;;  %v873_v14 = vld [vmem:[#allocation7 + $0x4] ss:$16 sps:$4 sm:$0xff]   ;;  %v878_v15 = vld [vmem:[#allocation7] ss:$16 sps:$4 sm:$0xff]   ;;  %s740_s8 = sshll.u32 %s1095_s2, 4  ;;  %s741_s8 = int_to_ptr.vmem [resolvable:$true] %s740_s8 }
  0x3d   :  { %v66_v13 = vmax.f32 %v64_v11, 0.0  ;;  %67 = vst [vmem:[#allocation9] sm:$0xff] %v65_v12  ;;  %621 = vmatprep.subr.bf16.mxu1 %v873_v14  ;;  %v879_v16 = vld [vmem:[#allocation7 + $0x24] ss:$16 sps:$4 sm:$0xff]   ;;  %v863_v17 = vld [vmem:[#allocation5 + $0x40] ss:$8 sps:$4 sm:$0xff]   ;;  %p1040_p11 = scmp.lt.s32.totalorder %s741_s8, %s741_s8 }
  0x3e   :  { %169 = vmatpush1.bf16.msra.mxu0 %v854_v4  ;;  %622 = vmatpush1.bf16.msra.mxu1 %v878_v15  ;;  %v864_v18 = vld [vmem:[#allocation5 + $0x54] ss:$8 sps:$4 sm:$0xff]   ;;  %v884_v19 = vld [vmem:[#allocation7 + $0x20] ss:$16 sps:$4 sm:$0xff]   ;;  %v867_v22 = vld [vmem:[#allocation5 + $0x64] ss:$8 sps:$4 sm:$0xff]  }
  0x3f   :  { %170 = vmatprep.subr.bf16.mxu0 %v855_v5  ;;  %68 = vst [vmem:[#allocation9 + $0x8] sm:$0xff] %v66_v13  ;;  %623 = vmatprep.subr.bf16.mxu1 %v879_v16  ;;  %v885_v20 = vld [vmem:[#allocation7 + $0x44] ss:$16 sps:$4 sm:$0xff]   ;;  %v866_v21 = vld [vmem:[#allocation5 + $0x50] ss:$8 sps:$4 sm:$0xff]   ;;  %v69_v33 = vpack.c.bf16 %v66_v13, %v65_v12  ;;  %s1035_s9 = scalar_lea.vmem %s741_s8, 256 }
  0x40   :  { %v890_v23 = vld [vmem:[#allocation7 + $0x40] ss:$16 sps:$4 sm:$0xff]   ;;  %v891_v24 = vld [vmem:[#allocation7 + $0x64] ss:$16 sps:$4 sm:$0xff]   ;;  %v877_v30 = vld [vmem:[#allocation7 + $0xc] ss:$16 sps:$4 sm:$0xff]   ;;  %p1036_p10 = scmp.ne.s32.totalorder %s741_s8, %s1035_s9  ;;  %p1041_p12 = scmp.lt.s32.totalorder %s1035_s9, %s1035_s9 }
  0x41   :  { %v869_v25 = vld [vmem:[#allocation5 + $0x60] ss:$8 sps:$4 sm:$0xff]   ;;  %v870_v27 = vld [vmem:[#allocation5 + $0x74] ss:$8 sps:$4 sm:$0xff]   ;;  %v872_v29 = vld [vmem:[#allocation5 + $0x70] ss:$8 sps:$4 sm:$0xff]  }
  0x42   :  { %171 = vmatpush1.bf16.msra.mxu0 %v857_v6  ;;  %624 = vmatpush1.bf16.msra.mxu1 %v884_v19  ;;  %v896_v26 = vld [vmem:[#allocation7 + $0x60] ss:$16 sps:$4 sm:$0xff]   ;;  %v897_v28 = vld [vmem:[#allocation7 + $0x84] ss:$16 sps:$4 sm:$0xff]   ;;  %v875_v34 = vld [vmem:[#allocation7 + $0x8] ss:$16 sps:$4 sm:$0xff]   ;;  %p1042_p13 = por %p1041_p12, %p1040_p11 }
  0x43   :  { %172 = vmatprep.subr.bf16.mxu0 %v858_v7  ;;  %625 = vmatprep.subr.bf16.mxu1 %v885_v20  ;;  %v902_v31 = vld [vmem:[#allocation7 + $0x80] ss:$16 sps:$4 sm:$0xff]   ;;  %v903_v32 = vld [vmem:[#allocation7 + $0xa4] ss:$16 sps:$4 sm:$0xff]   ;;  %v883_v36 = vld [vmem:[#allocation7 + $0x2c] ss:$16 sps:$4 sm:$0xff]  }
  0x44   :  { %v908_v35 = vld [vmem:[#allocation7 + $0xa0] ss:$16 sps:$4 sm:$0xff]   ;;  %v909_v37 = vld [vmem:[#allocation7 + $0xc4] ss:$16 sps:$4 sm:$0xff]   ;;  %v881_v38 = vld [vmem:[#allocation7 + $0x28] ss:$16 sps:$4 sm:$0xff]   ;;  %p1043_p0 = pnand %p1042_p13, %p1036_p10 }
  0x45   :  { %v889_v39 = vld [vmem:[#allocation7 + $0x4c] ss:$16 sps:$4 sm:$0xff]   ;;  %v914_v40 = vld [vmem:[#allocation7 + $0xc0] ss:$16 sps:$4 sm:$0xff]   ;;  %v915_v41 = vld [vmem:[#allocation7 + $0xe4] ss:$16 sps:$4 sm:$0xff]  }
  0x46   :  { %173 = vmatpush1.bf16.msra.mxu0 %v860_v8  ;;  %626 = vmatpush1.bf16.msra.mxu1 %v890_v23  ;;  %v887_v42 = vld [vmem:[#allocation7 + $0x48] ss:$16 sps:$4 sm:$0xff]   ;;  %v920_v43 = vld [vmem:[#allocation7 + $0xe0] ss:$16 sps:$4 sm:$0xff]   ;;  %v895_v44 = vld [vmem:[#allocation7 + $0x6c] ss:$16 sps:$4 sm:$0xff]  }
  0x47   :  { %174 = vmatprep.subr.bf16.mxu0 %v861_v9  ;;  %627 = vmatprep.subr.bf16.mxu1 %v891_v24  ;;  %v921_v45 = vld [vmem:[#allocation7 + $0x104] ss:$16 sps:$4 sm:$0xff]   ;;  %v893_v46 = vld [vmem:[#allocation7 + $0x68] ss:$16 sps:$4 sm:$0xff]   ;;  %v901_v47 = vld [vmem:[#allocation7 + $0x8c] ss:$16 sps:$4 sm:$0xff]  }
  0x48   :  { %v926_v48 = vld [vmem:[#allocation7 + $0x100] ss:$16 sps:$4 sm:$0xff]   ;;  %v927_v49 = vld [vmem:[#allocation7 + $0x124] ss:$16 sps:$4 sm:$0xff]   ;;  %v899_v50 = vld [vmem:[#allocation7 + $0x88] ss:$16 sps:$4 sm:$0xff]  }
  0x49   :  { %v932_v51 = vld [vmem:[#allocation7 + $0x120] ss:$16 sps:$4 sm:$0xff]   ;;  %v907_v52 = vld [vmem:[#allocation7 + $0xac] ss:$16 sps:$4 sm:$0xff]   ;;  %v933_v53 = vld [vmem:[#allocation7 + $0x144] ss:$16 sps:$4 sm:$0xff]  }
  0x4a   :  { %175 = vmatpush1.bf16.msra.mxu0 %v863_v17  ;;  %628 = vmatpush1.bf16.msra.mxu1 %v896_v26  ;;  %v905_v54 = vld [vmem:[#allocation7 + $0xa8] ss:$16 sps:$4 sm:$0xff]   ;;  %v938_v55 = vld [vmem:[#allocation7 + $0x140] ss:$16 sps:$4 sm:$0xff]   ;;  %v913_v56 = vld [vmem:[#allocation7 + $0xcc] ss:$16 sps:$4 sm:$0xff]  }
  0x4b   :  { %176 = vmatprep.subr.bf16.mxu0 %v864_v18  ;;  %629 = vmatprep.subr.bf16.mxu1 %v897_v28  ;;  %v939_v57 = vld [vmem:[#allocation7 + $0x164] ss:$16 sps:$4 sm:$0xff]   ;;  %v911_v58 = vld [vmem:[#allocation7 + $0xc8] ss:$16 sps:$4 sm:$0xff]   ;;  %v944_v59 = vld [vmem:[#allocation7 + $0x160] ss:$16 sps:$4 sm:$0xff]  }
  0x4c   :  { %v919_v60 = vld [vmem:[#allocation7 + $0xec] ss:$16 sps:$4 sm:$0xff]   ;;  %v945_v61 = vld [vmem:[#allocation7 + $0x184] ss:$16 sps:$4 sm:$0xff]   ;;  %v917_v62 = vld [vmem:[#allocation7 + $0xe8] ss:$16 sps:$4 sm:$0xff]  }
  0x4d   :  { %v950_v63 = vld [vmem:[#allocation7 + $0x180] ss:$16 sps:$4 sm:$0xff]   ;;  %v925_v0 = vld [vmem:[#allocation7 + $0x10c] ss:$16 sps:$4 sm:$0xff]   ;;  %v951_v1 = vld [vmem:[#allocation7 + $0x1a4] ss:$16 sps:$4 sm:$0xff]  }
  0x4e   :  { %177 = vmatpush1.bf16.msra.mxu0 %v866_v21  ;;  %630 = vmatpush1.bf16.msra.mxu1 %v902_v31  ;;  %v923_v2 = vld [vmem:[#allocation7 + $0x108] ss:$16 sps:$4 sm:$0xff]   ;;  %v956_v3 = vld [vmem:[#allocation7 + $0x1a0] ss:$16 sps:$4 sm:$0xff]   ;;  %v931_v4 = vld [vmem:[#allocation7 + $0x12c] ss:$16 sps:$4 sm:$0xff]  }
  0x4f   :  { %178 = vmatprep.subr.bf16.mxu0 %v867_v22  ;;  %631 = vmatprep.subr.bf16.mxu1 %v903_v32  ;;  %v929_v5 = vld [vmem:[#allocation7 + $0x128] ss:$16 sps:$4 sm:$0xff]   ;;  %v937_v6 = vld [vmem:[#allocation7 + $0x14c] ss:$16 sps:$4 sm:$0xff]   ;;  %v957_v14 = vld [vmem:[#allocation7 + $0x1c4] ss:$16 sps:$4 sm:$0xff]  }
  0x50   :  { %v935_v7 = vld [vmem:[#allocation7 + $0x148] ss:$16 sps:$4 sm:$0xff]   ;;  %v943_v8 = vld [vmem:[#allocation7 + $0x16c] ss:$16 sps:$4 sm:$0xff]   ;;  %v962_v17 = vld [vmem:[#allocation7 + $0x1c0] ss:$16 sps:$4 sm:$0xff]  }
  0x51   :  { %v941_v9 = vld [vmem:[#allocation7 + $0x168] ss:$16 sps:$4 sm:$0xff]   ;;  %v949_v10 = vld [vmem:[#allocation7 + $0x18c] ss:$16 sps:$4 sm:$0xff]   ;;  %v963_v18 = vld [vmem:[#allocation7 + $0x1e4] ss:$16 sps:$4 sm:$0xff]  }
  0x52   :  { %179 = vmatpush1.bf16.msra.mxu0 %v869_v25  ;;  %632 = vmatpush1.bf16.msra.mxu1 %v908_v35  ;;  %v947_v11 = vld [vmem:[#allocation7 + $0x188] ss:$16 sps:$4 sm:$0xff]   ;;  %v955_v12 = vld [vmem:[#allocation7 + $0x1ac] ss:$16 sps:$4 sm:$0xff]   ;;  %v968_v21 = vld [vmem:[#allocation7 + $0x1e0] ss:$16 sps:$4 sm:$0xff]  }
  0x53   :  { %180 = vmatprep.subr.bf16.mxu0 %v870_v27  ;;  %633 = vmatprep.subr.bf16.mxu1 %v909_v37  ;;  %v953_v13 = vld [vmem:[#allocation7 + $0x1a8] ss:$16 sps:$4 sm:$0xff]   ;;  %v961_v15 = vld [vmem:[#allocation7 + $0x1cc] ss:$16 sps:$4 sm:$0xff]  }
  0x54   :  { %v959_v16 = vld [vmem:[#allocation7 + $0x1c8] ss:$16 sps:$4 sm:$0xff]   ;;  %v967_v19 = vld [vmem:[#allocation7 + $0x1ec] ss:$16 sps:$4 sm:$0xff]  }
  0x55   :  { %v965_v20 = vld [vmem:[#allocation7 + $0x1e8] ss:$16 sps:$4 sm:$0xff]  }
  0x56   :  { %181 = vmatpush1.bf16.msra.mxu0 %v872_v29  ;;  %634 = vmatpush1.bf16.msra.mxu1 %v914_v40 }
  0x57   :  { %664 = vmatprep.subr.bf16.mxu0 %v877_v30  ;;  %635 = vmatprep.subr.bf16.mxu1 %v915_v41 }
  0x59   :  { %199 = vmatmul.mubr.bf16.vlgmr.msra.gmra.mrb[0].mxu0 %v69_v33 }
  0x5a   :  { %665 = vmatpush1.bf16.msra.mxu0 %v875_v34  ;;  %636 = vmatpush1.bf16.msra.mxu1 %v920_v43 }
  0x5b   :  { %666 = vmatprep.subr.bf16.mxu0 %v883_v36  ;;  %637 = vmatprep.subr.bf16.mxu1 %v921_v45 }
  0x5e   :  { %667 = vmatpush1.bf16.msra.mxu0 %v881_v38  ;;  %638 = vmatpush1.bf16.msra.mxu1 %v926_v48 }
  0x5f   :  { %668 = vmatprep.subr.bf16.mxu0 %v889_v39  ;;  %639 = vmatprep.subr.bf16.mxu1 %v927_v49 }
  0x62   :  { %669 = vmatpush1.bf16.msra.mxu0 %v887_v42  ;;  %640 = vmatpush1.bf16.msra.mxu1 %v932_v51 }
  0x63   :  { %670 = vmatprep.subr.bf16.mxu0 %v895_v44  ;;  %641 = vmatprep.subr.bf16.mxu1 %v933_v53 }
  0x66   :  { %671 = vmatpush1.bf16.msra.mxu0 %v893_v46  ;;  %642 = vmatpush1.bf16.msra.mxu1 %v938_v55 }
  0x67   :  { %672 = vmatprep.subr.bf16.mxu0 %v901_v47  ;;  %643 = vmatprep.subr.bf16.mxu1 %v939_v57 }
  0x6a   :  { %673 = vmatpush1.bf16.msra.mxu0 %v899_v50  ;;  %644 = vmatpush1.bf16.msra.mxu1 %v944_v59 }
  0x6b   :  { %674 = vmatprep.subr.bf16.mxu0 %v907_v52  ;;  %645 = vmatprep.subr.bf16.mxu1 %v945_v61 }
  0x6e   :  { %675 = vmatpush1.bf16.msra.mxu0 %v905_v54  ;;  %646 = vmatpush1.bf16.msra.mxu1 %v950_v63 }
  0x6f   :  { %676 = vmatprep.subr.bf16.mxu0 %v913_v56  ;;  %647 = vmatprep.subr.bf16.mxu1 %v951_v1 }
  0x72   :  { %677 = vmatpush1.bf16.msra.mxu0 %v911_v58  ;;  %648 = vmatpush1.bf16.msra.mxu1 %v956_v3 }
  0x73   :  { %678 = vmatprep.subr.bf16.mxu0 %v919_v60  ;;  %649 = vmatprep.subr.bf16.mxu1 %v957_v14 }
  0x76   :  { %679 = vmatpush1.bf16.msra.mxu0 %v917_v62  ;;  %650 = vmatpush1.bf16.msra.mxu1 %v962_v17 }
  0x77   :  { %680 = vmatprep.subr.bf16.mxu0 %v925_v0  ;;  %651 = vmatprep.subr.bf16.mxu1 %v963_v18 }
  0x7a   :  { %681 = vmatpush1.bf16.msra.mxu0 %v923_v2  ;;  %652 = vmatpush1.bf16.msra.mxu1 %v968_v21 }
  0x7b   :  { %682 = vmatprep.subr.bf16.mxu0 %v931_v4 }
  0x7e   :  { %683 = vmatpush1.bf16.msra.mxu0 %v929_v5 }
  0x7f   :  { %684 = vmatprep.subr.bf16.mxu0 %v937_v6 }
  0x82   :  { %685 = vmatpush1.bf16.msra.mxu0 %v935_v7 }
  0x83   :  { %686 = vmatprep.subr.bf16.mxu0 %v943_v8 }
  0x86   :  { %687 = vmatpush1.bf16.msra.mxu0 %v941_v9 }
  0x87   :  { %688 = vmatprep.subr.bf16.mxu0 %v949_v10 }
  0x8a   :  { %689 = vmatpush1.bf16.msra.mxu0 %v947_v11 }
  0x8b   :  { %690 = vmatprep.subr.bf16.mxu0 %v955_v12 }
  0x8e   :  { %691 = vmatpush1.bf16.msra.mxu0 %v953_v13 }
  0x8f   :  { %692 = vmatprep.subr.bf16.mxu0 %v961_v15 }
  0x92   :  { %693 = vmatpush1.bf16.msra.mxu0 %v959_v16 }
  0x93   :  { %694 = vmatprep.subr.bf16.mxu0 %v967_v19 }
  0x96   :  { %695 = vmatpush1.bf16.msra.mxu0 %v965_v20 }
 0x12c   :  { %v200_v22 = vpop.f32.mrb[0].mxu0 }
 0x12d   :  { %v202_v23 = vpop.f32.mrb[1].mxu0  ;;  %v209_v25 = vmax.f32 %v200_v22, 0.0 }
 0x12e   :  { %v204_v24 = vpop.f32.mrb[2].mxu0  ;;  %v210_v28 = vmax.f32 %v202_v23, 0.0 }
 0x12f   :  { %v211_v26 = vmax.f32 %v204_v24, 0.0  ;;  %v206_v27 = vpop.f32.mrb[3].mxu0 }
 0x130   :  { %v212_v29 = vmax.f32 %v206_v27, 0.0 }
 0x131   :  { %v213_v30 = vpack.c.bf16 %v211_v26, %v209_v25 }
 0x132   :  { %v214_v31 = vpack.c.bf16 %v212_v29, %v210_v28 }
 0x134   :  { %653 = vmatprep.mubr.bf16.mxu1 %v214_v31  ;;  %696 = vmatprep.mubr.bf16.mxu0 %v214_v31 }
 0x135   :  { %654 = vmatmul.mubr.bf16.vlgmr.msra.gmra.mrb[0].mxu1 %v213_v30  ;;  %697 = vmatmul.mubr.bf16.vlgmr.msra.gmra.mrb[4].mxu0 %v213_v30 }
 0x136   :  { %1046 = shalt.err (!%p1043_p0)
}
 0x137   :  { %s1047_s12 = scalar_lea.hbm %s1213_s5, 256 }
 0x138   :  { %p1048_p1 = scmp.ne.s32.totalorder %s1213_s5, %s1047_s12  ;;  %p1051_p2 = scmp.lt.u32.totalorder %s1047_s12, %s1213_s5 }
 0x13a   :  { %p1053_p3 = pnand %p1051_p2, %p1048_p1 }
 0x13c   :  { %1056 = shalt.err (!%p1053_p3)
}
 0x13d   :  { %746 = dma.vmem_to_hbm [thread:$0]  %s741_s8, 256, %s1213_s5, [#allocation10], %s1089_s30, %s1089_s30, %s1090_s6   ;;  %v281_v32 = vlaneseq }
 0x13e   :  { %v279_v36 = vld [vmem:[%s1211_s3] sm:$0xf]  ;;  %s1096_s5 = smov [#allocation8]  }
 0x13f   :  { %v282_v33 = vshrl.u32 %v281_v32, 7  ;;  %s728_s30 = sshll.u32 %s1096_s5, 4  ;;  %s729_s30 = int_to_ptr.vmem [resolvable:$true] %s728_s30 }
 0x140   :  { %s1057_s3 = scalar_lea.vmem %s729_s30, 1024  ;;  %p1062_p5 = scmp.lt.s32.totalorder %s729_s30, %s729_s30 }
 0x141   :  { %v283_v34 = vsub.s32 0, %v282_v33  ;;  %v291_v35 = vsub.s32 2, %v282_v33  ;;  %v287_v37 = vsub.s32 1, %v282_v33  ;;  %v295_v38 = vsub.s32 3, %v282_v33  ;;  %p1058_p4 = scmp.ne.s32.totalorder %s729_s30, %s1057_s3  ;;  %p1063_p6 = scmp.lt.s32.totalorder %s1057_s3, %s1057_s3 }
 0x143   :  { %v284_v39 = vrot.slane %v279_v36, %v283_v34  ;;  %v292_v40 = vrot.slane %v279_v36, %v291_v35  ;;  %v288_v41 = vrot.slane %v279_v36, %v287_v37  ;;  %v296_v42 = vrot.slane %v279_v36, %v295_v38  ;;  %p1064_p7 = por %p1063_p6, %p1062_p5 }
 0x145   :  { %p1065_p8 = pnand %p1064_p7, %p1058_p4 }
 0x208   :  { %v655_v43 = vpop.f32.mrb[0].mxu1  ;;  %v698_v44 = vpop.f32.mrb[4].mxu0 }
 0x209   :  { %v656_v45 = vadd.f32 %v655_v43, %v284_v39  ;;  %v699_v46 = vadd.f32 %v698_v44, %v292_v40  ;;  %v657_v47 = vpop.f32.mrb[1].mxu1  ;;  %v700_v48 = vpop.f32.mrb[5].mxu0 }
 0x20a   :  { %v658_v49 = vadd.f32 %v657_v47, %v288_v41  ;;  %v701_v50 = vadd.f32 %v700_v48, %v296_v42  ;;  %v659_v51 = vpop.f32.mrb[2].mxu1  ;;  %v702_v52 = vpop.f32.mrb[6].mxu0 }
 0x20b   :  { %v707_v53 = vmax.f32 %v656_v45, 0.0  ;;  %v709_v54 = vmax.f32 %v699_v46, 0.0  ;;  %v660_v55 = vadd.f32 %v659_v51, %v284_v39  ;;  %v703_v56 = vadd.f32 %v702_v52, %v292_v40  ;;  %v661_v57 = vpop.f32.mrb[3].mxu1  ;;  %v704_v58 = vpop.f32.mrb[7].mxu0 }
 0x20c   :  { %v708_v59 = vmax.f32 %v658_v49, 0.0  ;;  %v710_v60 = vmax.f32 %v701_v50, 0.0  ;;  %v662_v61 = vadd.f32 %v661_v57, %v288_v41  ;;  %v705_v62 = vadd.f32 %v704_v58, %v296_v42 }
 0x20d   :  { %715 = vst [vmem:[#allocation8] sm:$0xff] %v707_v53  ;;  %717 = vst [vmem:[#allocation8 + $0x10] sm:$0xff] %v709_v54  ;;  %v711_v63 = vmax.f32 %v660_v55, 0.0  ;;  %v713_v0 = vmax.f32 %v703_v56, 0.0 }
 0x20e   :  { %716 = vst [vmem:[#allocation8 + $0x8] sm:$0xff] %v708_v59  ;;  %718 = vst [vmem:[#allocation8 + $0x18] sm:$0xff] %v710_v60  ;;  %v712_v1 = vmax.f32 %v662_v61, 0.0  ;;  %v714_v2 = vmax.f32 %v705_v62, 0.0 }
 0x20f   :  { %719 = vst [vmem:[#allocation8 + $0x20] sm:$0xff] %v711_v63  ;;  %721 = vst [vmem:[#allocation8 + $0x30] sm:$0xff] %v713_v0 }
 0x210   :  { %720 = vst [vmem:[#allocation8 + $0x28] sm:$0xff] %v712_v1  ;;  %722 = vst [vmem:[#allocation8 + $0x38] sm:$0xff] %v714_v2 }
 0x211   :  { %1068 = shalt.err (!%p1065_p8)
}
 0x212   :  { %s1069_s22 = scalar_lea.hbm %s1212_s4, 1024 }
 0x213   :  { %p1070_p9 = scmp.ne.s32.totalorder %s1212_s4, %s1069_s22  ;;  %p1073_p10 = scmp.lt.u32.totalorder %s1069_s22, %s1212_s4 }
 0x215   :  { %p1075_p11 = pnand %p1073_p10, %p1070_p9 }
 0x217   :  { %1078 = shalt.err (!%p1075_p11)
}
 0x218   :  { %s1097_s27 = smov 512   ;;  %s1098_s28 = smov 32  }
 0x219   :  { %734 = dma.vmem_to_hbm [thread:$0]  %s729_s30, 1024, %s1212_s4, [#allocation4], %s1097_s27, %s1097_s27, %s1098_s28  }
 0x21a   :  { %1083 = dma.done.wait [#allocation4], 1024  }
 0x21b   :  { %1084 = vsyncadd [#allocation4], 4294966272 }
 0x21c   :  { %1085 = dma.done.wait [#allocation10], 256  }
 0x21d   :  { %1086 = vsyncadd [#allocation10], 4294967040 }
 0x21e   :  { %753 = vsyncpa [#allocation3], 1 }
 0x21f   :  { %754 = vsyncpa [#allocation6], 1 }
 0x220   :  { %755 = vsyncpa [#allocation4], 1 }
 0x221   :  { %756 = vsyncpa [#allocation10], 1 }

</bundles_post_ra>
